<compile_context>
chip_gen: v7x
topology: tpu7x:2x2x1
jax: 0.10.0
libtpu: 0.0.40
codegen_flags: <defaults>
</compile_context>

<pallas_src>
import functools

import jax
import jax.numpy as jnp
from jax import lax
from jax.experimental import pallas as pl
from jax.experimental.pallas import tpu as pltpu

MARGIN = 1.0
NORM_EPS = 1e-12                   # F.normalize eps (max(||x||, eps))
NORM_EPS_SQ = NORM_EPS * NORM_EPS  # same clamp applied to the squared norm
# NOTE: PyTorch's cosine_similarity additionally clamps the product of the
# (already-normalized) norms at 1e-8; this only diverges for near-zero vectors.


def _round_up(x, m):
    return ((x + m - 1) // m) * m


def _triplet_loss_kernel(a_ref, p_ref, n_ref, loss_ref, *, batch_size, tile_b):
    i = pl.program_id(0)

    a = a_ref[...].astype(jnp.float32)
    p = p_ref[...].astype(jnp.float32)
    n = n_ref[...].astype(jnp.float32)

    # 5 cross-lane reductions total (vs. 9 in the naive normalize+cosine form),
    # and no full-size normalized temporaries.
    # TODO(synk): if a v7x bundle dump shows the XLU reduce slot binding at
    # D=128, replace these with MXU row-dots against a ones (D, 1) column.
    sa = jnp.sum(a * a, axis=1, keepdims=True)    # (TILE_B, 1)
    sp = jnp.sum(p * p, axis=1, keepdims=True)
    sn = jnp.sum(n * n, axis=1, keepdims=True)
    dap = jnp.sum(a * p, axis=1, keepdims=True)
    dan = jnp.sum(a * n, axis=1, keepdims=True)

    # 1 / max(||x||, 1e-12) == rsqrt(max(||x||^2, 1e-24)); rsqrt goes to the EUP
    # slot instead of VALU divides.
    inv_na = lax.rsqrt(jnp.maximum(sa, NORM_EPS_SQ))
    inv_np = lax.rsqrt(jnp.maximum(sp, NORM_EPS_SQ))
    inv_nn = lax.rsqrt(jnp.maximum(sn, NORM_EPS_SQ))

    cos_ap = dap * inv_na * inv_np
    cos_an = dan * inv_na * inv_nn

    # relu((1 - cos_ap) - (1 - cos_an) + margin) == relu(cos_an - cos_ap + margin)
    losses = jnp.maximum(cos_an - cos_ap + MARGIN, 0.0)      # (TILE_B, 1)

    # Zero rows past the true batch size (last tile may be padded with garbage,
    # which could otherwise carry NaN into the result).
    row = i * tile_b + lax.broadcasted_iota(jnp.int32, losses.shape, 0)
    loss_ref[...] = jnp.where(row < batch_size, losses, 0.0)


def triplet_loss(anchor, positive, negative, *, tile_b=None):
    B, D = anchor.shape
    assert positive.shape == (B, D) and negative.shape == (B, D)

    itemsize = jnp.dtype(anchor.dtype).itemsize
    sub = max(8, 32 // itemsize)       # min sublane tile: 8 f32 / 16 bf16 / 32 int8

    # VMEM bytes per batch row at the chosen tile: 3 inputs x 2 pipeline buffers,
    # f32 upcast copies for sub-32-bit inputs, plus ~5 (TILE_B, D) f32 product
    # temporaries inside the kernel body.
    bytes_per_row = 3 * 2 * D * itemsize
    if itemsize != 4:
        bytes_per_row += 3 * D * 4
    bytes_per_row += 5 * D * 4

    vmem_budget = 36 * 1024 * 1024     # headroom under v7x's 64 MiB physical VMEM

    if tile_b is None:
        # ~4 MiB per input block (f32 streaming reaches ~86% of HBM roofline
        # there), bounded by the total-VMEM budget above.
        tile_b = min((4 * 1024 * 1024) // (D * itemsize),
                     vmem_budget // bytes_per_row)
        tile_b = max(sub, (tile_b // sub) * sub)
        # Keep >= 4 grid steps on big batches: shards the parallel axis across
        # both v7x TensorCores and always leaves a next block to prefetch.
        if B >= 4 * sub:
            tile_b = min(tile_b, _round_up(pl.cdiv(B, 4), sub))

    if tile_b >= B:
        tile_b = B                             # single full-extent block is legal
    else:
        tile_b = max(sub, (tile_b // sub) * sub)  # dtype sublane multiple

    num_tiles = pl.cdiv(B, tile_b)

    # Explicit scoped-VMEM limit matched to the tiling (includes the (TILE_B,1)
    # f32 output double-buffers).
    vmem_est = tile_b * bytes_per_row + 2 * 2 * tile_b * 4
    vmem_limit = int(min(56 * 1024 * 1024,
                         max(int(vmem_est * 1.25), 32 * 1024 * 1024)))

    kernel = functools.partial(_triplet_loss_kernel, batch_size=B, tile_b=tile_b)
    in_spec = pl.BlockSpec((tile_b, D), lambda i: (i, 0))

    per_row = pl.pallas_call(
        kernel,
        out_shape=jax.ShapeDtypeStruct((B, 1), jnp.float32),
        grid=(num_tiles,),
        in_specs=[in_spec, in_spec, in_spec],
        out_specs=pl.BlockSpec((tile_b, 1), lambda i: (i, 0)),
        compiler_params=pltpu.CompilerParams(
            dimension_semantics=("parallel",),
            vmem_limit_bytes=vmem_limit),
        cost_estimate=pl.CostEstimate(
            flops=10 * B * D,
            transcendentals=3 * B,
            bytes_accessed=3 * B * D * itemsize + B * 4),
    )(anchor, positive, negative)

    return jnp.mean(per_row)


def _reference(anchor, positive, negative):
    anchor = anchor.astype(jnp.float32)
    positive = positive.astype(jnp.float32)
    negative = negative.astype(jnp.float32)

    def l2n(x):
        return x / jnp.maximum(jnp.linalg.norm(x, axis=1, keepdims=True), NORM_EPS)

    a, p, n = l2n(anchor), l2n(positive), l2n(negative)

    def cos(x, y):
        return jnp.sum(x * y, axis=1) / jnp.maximum(
            jnp.linalg.norm(x, axis=1) * jnp.linalg.norm(y, axis=1), 1e-8)

    dp = 1.0 - cos(a, p)
    dn = 1.0 - cos(a, n)
    return jnp.mean(jnp.maximum(dp - dn + MARGIN, 0.0))


if __name__ == "__main__":
    key = jax.random.PRNGKey(0)

    # Case 1: small f32 batch, single full-extent block.
    k1, k2, k3 = jax.random.split(key, 3)
    B, D = 8, 128
    anchor = jax.random.normal(k1, (B, D), dtype=jnp.float32)
    positive = jax.random.normal(k2, (B, D), dtype=jnp.float32)
    negative = jax.random.normal(k3, (B, D), dtype=jnp.float32)

    loss = triplet_loss(anchor, positive, negative)
    jax.block_until_ready(loss)
    ref = _reference(anchor, positive, negative)
    assert jnp.allclose(loss, ref, atol=1e-5, rtol=1e-5), (loss, ref)

    # Case 2: multi-tile f32 grid with a ragged last tile (masking + mean).
    k4, k5, k6 = jax.random.split(jax.random.PRNGKey(1), 3)
    B2, D2 = 20, 128
    a2 = jax.random.normal(k4, (B2, D2), dtype=jnp.float32)
    p2 = jax.random.normal(k5, (B2, D2), dtype=jnp.float32)
    n2 = jax.random.normal(k6, (B2, D2), dtype=jnp.float32)

    loss2 = triplet_loss(a2, p2, n2, tile_b=8)   # grid=(3,), last tile 4 valid rows
    jax.block_until_ready(loss2)
    ref2 = _reference(a2, p2, n2)
    assert jnp.allclose(loss2, ref2, atol=1e-5, rtol=1e-5), (loss2, ref2)

    # Case 3: bf16 inputs, multi-tile grid with a ragged last tile (exercises the
    # dtype-dependent sublane rounding and the f32 upcast path).
    k7, k8, k9 = jax.random.split(jax.random.PRNGKey(2), 3)
    B3, D3 = 40, 128
    a3 = jax.random.normal(k7, (B3, D3), dtype=jnp.float32).astype(jnp.bfloat16)
    p3 = jax.random.normal(k8, (B3, D3), dtype=jnp.float32).astype(jnp.bfloat16)
    n3 = jax.random.normal(k9, (B3, D3), dtype=jnp.float32).astype(jnp.bfloat16)

    loss3 = triplet_loss(a3, p3, n3, tile_b=16)  # grid=(3,), last tile 8 valid rows
    jax.block_until_ready(loss3)
    ref3 = _reference(a3, p3, n3)
    assert jnp.allclose(loss3, ref3, atol=1e-4, rtol=1e-4), (loss3, ref3)

    print("KERNEL_OK")
</pallas_src>

<mosaic_0001>
module attributes {stable_mosaic.version = 11 : i64} {
  func.func @_triplet_loss_kernel(%arg0: i32, %arg1: memref<8x128xf32, #tpu.memory_space<vmem>>, %arg2: memref<8x128xf32, #tpu.memory_space<vmem>>, %arg3: memref<8x128xf32, #tpu.memory_space<vmem>>, %arg4: memref<8x1xf32, #tpu.memory_space<vmem>>) attributes {dimension_semantics = [#tpu.dimension_semantics<parallel>], iteration_bounds = array<i64: 1>, scalar_prefetch = 0 : i64, scratch_operands = 0 : i64, tpu.core_type = #tpu.core_type<tc>, window_params = [{transform_indices = @transform_0, window_bounds = array<i64: 8, 128>}, {transform_indices = @transform_1, window_bounds = array<i64: 8, 128>}, {transform_indices = @transform_2, window_bounds = array<i64: 8, 128>}, {transform_indices = @transform_3, window_bounds = array<i64: 8, 1>}]} {
    %c0 = arith.constant 0 : index
    %c0_0 = arith.constant 0 : index
    %0 = vector.load %arg1[%c0, %c0_0] : memref<8x128xf32, #tpu.memory_space<vmem>>, vector<8x128xf32>
    %c0_1 = arith.constant 0 : index
    %c0_2 = arith.constant 0 : index
    %1 = vector.load %arg2[%c0_1, %c0_2] : memref<8x128xf32, #tpu.memory_space<vmem>>, vector<8x128xf32>
    %c0_3 = arith.constant 0 : index
    %c0_4 = arith.constant 0 : index
    %2 = vector.load %arg3[%c0_3, %c0_4] : memref<8x128xf32, #tpu.memory_space<vmem>>, vector<8x128xf32>
    %3 = arith.mulf %0, %0 : vector<8x128xf32>
    %cst = arith.constant dense<0.000000e+00> : vector<8xf32>
    %4 = vector.multi_reduction <add>, %3, %cst [1] : vector<8x128xf32> to vector<8xf32>
    %5 = vector.shape_cast %4 : vector<8xf32> to vector<8x1xf32>
    %6 = arith.mulf %1, %1 : vector<8x128xf32>
    %cst_5 = arith.constant dense<0.000000e+00> : vector<8xf32>
    %7 = vector.multi_reduction <add>, %6, %cst_5 [1] : vector<8x128xf32> to vector<8xf32>
    %8 = vector.shape_cast %7 : vector<8xf32> to vector<8x1xf32>
    %9 = arith.mulf %2, %2 : vector<8x128xf32>
    %cst_6 = arith.constant dense<0.000000e+00> : vector<8xf32>
    %10 = vector.multi_reduction <add>, %9, %cst_6 [1] : vector<8x128xf32> to vector<8xf32>
    %11 = vector.shape_cast %10 : vector<8xf32> to vector<8x1xf32>
    %12 = arith.mulf %0, %1 : vector<8x128xf32>
    %cst_7 = arith.constant dense<0.000000e+00> : vector<8xf32>
    %13 = vector.multi_reduction <add>, %12, %cst_7 [1] : vector<8x128xf32> to vector<8xf32>
    %14 = vector.shape_cast %13 : vector<8xf32> to vector<8x1xf32>
    %15 = arith.mulf %0, %2 : vector<8x128xf32>
    %cst_8 = arith.constant dense<0.000000e+00> : vector<8xf32>
    %16 = vector.multi_reduction <add>, %15, %cst_8 [1] : vector<8x128xf32> to vector<8xf32>
    %17 = vector.shape_cast %16 : vector<8xf32> to vector<8x1xf32>
    %cst_9 = arith.constant 1.000000e-24 : f32
    %18 = vector.broadcast %cst_9 : f32 to vector<8x1xf32>
    %19 = arith.maximumf %5, %18 : vector<8x1xf32>
    %20 = math.rsqrt %19 : vector<8x1xf32>
    %cst_10 = arith.constant 1.000000e-24 : f32
    %21 = vector.broadcast %cst_10 : f32 to vector<8x1xf32>
    %22 = arith.maximumf %8, %21 : vector<8x1xf32>
    %23 = math.rsqrt %22 : vector<8x1xf32>
    %cst_11 = arith.constant 1.000000e-24 : f32
    %24 = vector.broadcast %cst_11 : f32 to vector<8x1xf32>
    %25 = arith.maximumf %11, %24 : vector<8x1xf32>
    %26 = math.rsqrt %25 : vector<8x1xf32>
    %27 = arith.mulf %14, %20 : vector<8x1xf32>
    %28 = arith.mulf %27, %23 : vector<8x1xf32>
    %29 = arith.mulf %17, %20 : vector<8x1xf32>
    %30 = arith.mulf %29, %26 : vector<8x1xf32>
    %31 = arith.subf %30, %28 : vector<8x1xf32>
    %cst_12 = arith.constant 1.000000e+00 : f32
    %32 = vector.broadcast %cst_12 : f32 to vector<8x1xf32>
    %33 = arith.addf %31, %32 : vector<8x1xf32>
    %cst_13 = arith.constant 0.000000e+00 : f32
    %34 = vector.broadcast %cst_13 : f32 to vector<8x1xf32>
    %35 = arith.maximumf %33, %34 : vector<8x1xf32>
    %c8_i32 = arith.constant 8 : i32
    %36 = arith.muli %arg0, %c8_i32 : i32
    %37 = tpu.iota {dimensions = array<i32: 0>} : vector<8x1xi32>
    %38 = vector.broadcast %36 : i32 to vector<8x1xi32>
    %39 = arith.addi %38, %37 : vector<8x1xi32>
    %c8_i32_14 = arith.constant 8 : i32
    %40 = vector.broadcast %c8_i32_14 : i32 to vector<8x1xi32>
    %41 = arith.cmpi slt, %39, %40 : vector<8x1xi32>
    %cst_15 = arith.constant 0.000000e+00 : f32
    %42 = vector.broadcast %cst_15 : f32 to vector<8x1xf32>
    %43 = arith.select %41, %35, %42 : vector<8x1xi1>, vector<8x1xf32>
    %c0_16 = arith.constant 0 : index
    %c0_17 = arith.constant 0 : index
    %44 = vector.load %arg4[%c0_16, %c0_17] : memref<8x1xf32, #tpu.memory_space<vmem>>, vector<8x1xf32>
    tpu.vector_store %arg4[%c0_16, %c0_17], %43 {strides = array<i32>} : memref<8x1xf32, #tpu.memory_space<vmem>>, vector<8x1xf32>,
    return
  }
  func.func @transform_0(%arg0: i32) -> (i32, i32) {
    %c0_i32 = arith.constant 0 : i32
    %c0_i32_0 = arith.constant 0 : i32
    return %arg0, %c0_i32 : i32, i32
  }
  func.func @transform_1(%arg0: i32) -> (i32, i32) {
    %c0_i32 = arith.constant 0 : i32
    %c0_i32_0 = arith.constant 0 : i32
    return %arg0, %c0_i32 : i32, i32
  }
  func.func @transform_2(%arg0: i32) -> (i32, i32) {
    %c0_i32 = arith.constant 0 : i32
    %c0_i32_0 = arith.constant 0 : i32
    return %arg0, %c0_i32 : i32, i32
  }
  func.func @transform_3(%arg0: i32) -> (i32, i32) {
    %c0_i32 = arith.constant 0 : i32
    %c0_i32_0 = arith.constant 0 : i32
    return %arg0, %c0_i32 : i32, i32
  }
}

</mosaic_0001>

<bundles_post_ra>
// kernel: tpu_custom_call.1
= control target key start
LH: loop header
LB: loop body
LE: loop exit
PB: predicated region body
PF: predicated region fallthrough
CT: control target
= control target key end

     0   :  { %8 = vsyncpa [#allocation3], 0  ;;  %s236_s0 = inlined_call_operand.hbm [shape: f32[8,128], index: 0, kind: input, shape index: {}]   ;;  %s237_s1 = inlined_call_operand.hbm [shape: f32[8,128], index: 1, kind: input, shape index: {}]   ;;  %s238_s2 = inlined_call_operand.hbm [shape: f32[8,128], index: 2, kind: input, shape index: {}]   ;;  %s239_s3 = inlined_call_operand.vmem [shape: f32[8,1], index: 3, kind: output, shape index: {}]  }
   0x1   :  { %9 = vsyncpa [#allocation5], 0  ;;  %s174_s12 = smov [#allocation4]   ;;  %s175_s14 = smov [#allocation2]  }
   0x2   :  { %s26_s13 = sshll.u32 %s174_s12, 4  ;;  %s16_s15 = sshll.u32 %s175_s14, 4  ;;  %s27_s13 = int_to_ptr.vmem [resolvable:$true] %s26_s13  ;;  %s17_s15 = int_to_ptr.vmem [resolvable:$true] %s16_s15 }
   0x3   :  { %s104_s18 = scalar_lea.hbm %s237_s1, 128 }
   0x4   :  { %p105_p0 = scmp.ne.s32.totalorder %s237_s1, %s104_s18  ;;  %p108_p1 = scmp.lt.u32.totalorder %s104_s18, %s237_s1 }
   0x6   :  { %p110_p2 = pnand %p108_p1, %p105_p0 }
   0x8   :  { %113 = shalt.err (!%p110_p2)
}
   0x9   :  { %s114_s23 = scalar_lea.vmem %s27_s13, 128  ;;  %p119_p4 = scmp.lt.s32.totalorder %s27_s13, %s27_s13 }
   0xa   :  { %p115_p3 = scmp.ne.s32.totalorder %s27_s13, %s114_s23  ;;  %p120_p5 = scmp.lt.s32.totalorder %s114_s23, %s114_s23 }
   0xc   :  { %p121_p6 = por %p120_p5, %p119_p4 }
   0xe   :  { %p122_p7 = pnand %p121_p6, %p115_p3 }
  0x10   :  { %125 = shalt.err (!%p122_p7)
}
  0x11   :  { %29 = dma.hbm_to_vmem [thread:$0]  %s237_s1, 128, %s27_s13, [#allocation5]  }
  0x12   :  { %s126_s28 = scalar_lea.hbm %s236_s0, 128 }
  0x13   :  { %p127_p8 = scmp.ne.s32.totalorder %s236_s0, %s126_s28  ;;  %p130_p9 = scmp.lt.u32.totalorder %s126_s28, %s236_s0 }
  0x15   :  { %p132_p10 = pnand %p130_p9, %p127_p8 }
  0x17   :  { %135 = shalt.err (!%p132_p10)
}
  0x18   :  { %s136_s6 = scalar_lea.vmem %s17_s15, 128  ;;  %p141_p12 = scmp.lt.s32.totalorder %s17_s15, %s17_s15 }
  0x19   :  { %p137_p11 = scmp.ne.s32.totalorder %s17_s15, %s136_s6  ;;  %p142_p13 = scmp.lt.s32.totalorder %s136_s6, %s136_s6 }
  0x1b   :  { %p143_p0 = por %p142_p13, %p141_p12 }
  0x1d   :  { %p144_p1 = pnand %p143_p0, %p137_p11 }
  0x1f   :  { %147 = shalt.err (!%p144_p1)
}
  0x20   :  { %19 = dma.hbm_to_vmem [thread:$0]  %s236_s0, 128, %s17_s15, [#allocation3]  }
  0x21   :  { %s176_s8 = smov [#allocation6]   ;;  %s148_s12 = scalar_lea.hbm %s238_s2, 128 }
  0x22   :  { %s36_s9 = sshll.u32 %s176_s8, 4  ;;  %p149_p2 = scmp.ne.s32.totalorder %s238_s2, %s148_s12  ;;  %s37_s9 = int_to_ptr.vmem [resolvable:$true] %s36_s9 }
  0x23   :  { %p152_p3 = scmp.lt.u32.totalorder %s148_s12, %s238_s2 }
  0x25   :  { %p154_p4 = pnand %p152_p3, %p149_p2 }
  0x27   :  { %157 = shalt.err (!%p154_p4)
}
  0x28   :  { %s158_s18 = scalar_lea.vmem %s37_s9, 128  ;;  %p163_p6 = scmp.lt.s32.totalorder %s37_s9, %s37_s9 }
  0x29   :  { %p159_p5 = scmp.ne.s32.totalorder %s37_s9, %s158_s18  ;;  %p164_p7 = scmp.lt.s32.totalorder %s158_s18, %s158_s18 }
  0x2b   :  { %p165_p8 = por %p164_p7, %p163_p6 }
  0x2d   :  { %p166_p9 = pnand %p165_p8, %p159_p5 }
  0x2f   :  { %169 = shalt.err (!%p166_p9)
}
  0x30   :  { %39 = dma.hbm_to_vmem [thread:$0]  %s238_s2, 128, %s37_s9, [#allocation5]  }
  0x31   :  { %170 = dma.done.wait [#allocation3], 128  }
  0x32   :  { %171 = vsyncadd [#allocation3], 4294967168 }
  0x33   :  { %172 = dma.done.wait [#allocation5], 256  }
  0x34   :  { %173 = vsyncadd [#allocation5], 4294967040  ;;  %v49_v0 = vld [vmem:[#allocation2] sm:$0xff]  ;;  %v51_v1 = vld [vmem:[#allocation6] sm:$0xff]  ;;  %vm87_vm0 = vcmask 7168  }
  0x35   :  { %v50_v2 = vld [vmem:[#allocation4] sm:$0xff]  ;;  %v52_v3 = vmul.f32 %v49_v0, %v49_v0  ;;  %v58_v4 = vmul.f32 %v51_v1, %v51_v1  ;;  %v64_v7 = vmul.f32 %v51_v1, %v49_v0 }
  0x36   :  { %v55_v5 = vmul.f32 %v50_v2, %v50_v2  ;;  %v61_v6 = vmul.f32 %v50_v2, %v49_v0 }
  0x37   :  { %53 = vadd.xlane.f32.xlu0 %v52_v3  ;;  %59 = vadd.xlane.f32.xlu1 %v58_v4 }
  0x3b   :  { %56 = vadd.xlane.f32.xlu0 %v55_v5  ;;  %62 = vadd.xlane.f32.xlu1 %v61_v6 }
  0x3f   :  { %65 = vadd.xlane.f32.xlu0 %v64_v7 }
  0xc4   :  { %v54_v8 = vpop.xlane.xlu0 %53  ;;  %v60_v9 = vpop.xlane.xlu1 %59 }
  0xc5   :  { %v67_v10 = vmax.f32 %v54_v8, 1e-24  ;;  %v71_v11 = vmax.f32 %v60_v9, 1e-24 }
  0xc7   :  { %98 = vrsqrt.f32 %v67_v10 }
  0xc8   :  { %v57_v12 = vpop.xlane.xlu0 %56  ;;  %100 = vrsqrt.f32 %v71_v11  ;;  %v63_v16 = vpop.xlane.xlu1 %62 }
  0xc9   :  { %v69_v13 = vmax.f32 %v57_v12, 1e-24 }
  0xcb   :  { %102 = vrsqrt.f32 %v69_v13 }
  0xcc   :  { %v66_v14 = vpop.xlane.xlu0 %65 }
  0xd1   :  { %v99_v15 = vpop.eup %98 }
  0xd2   :  { %v75_v17 = vmul.f32 %v99_v15, %v66_v14  ;;  %v101_v18 = vpop.eup %100  ;;  %v73_v19 = vmul.f32 %v99_v15, %v63_v16 }
  0xd4   :  { %v76_v22 = vmul.f32 %v101_v18, %v75_v17 }
  0xd5   :  { %v103_v20 = vpop.eup %102 }
  0xd6   :  { %v74_v21 = vmul.f32 %v103_v20, %v73_v19 }
  0xd8   :  { %v77_v23 = vsub.f32 %v76_v22, %v74_v21 }
  0xda   :  { %v78_v24 = vadd.f32 1.0, %v77_v23 }
  0xdc   :  { %v79_v25 = vmax.f32 %v78_v24, 0.0 }
  0xde   :  { %88 = vst.msk [vmem:[%s239_s3] sm:$0xff] %vm87_vm0, %v79_v25 }
  0xdf   :  { %93 = vsyncpa [#allocation3], 1 }
  0xe0   :  { %94 = vsyncpa [#allocation5], 1 }

</bundles_post_ra>
